<compile_context>
chip_gen: v7x
topology: tpu7x:2x2x1
jax: 0.10.0
libtpu: 0.0.40
codegen_flags: <defaults>
</compile_context>

<pallas_src>
import math

import numpy as np
import jax
import jax.numpy as jnp
from jax import lax
from jax.experimental import pallas as pl
from jax.experimental.pallas import tpu as pltpu


def _round_up(x, m):
    return ((x + m - 1) // m) * m


def token_embed_kernel(halo_ref, x_ref, w_ref, o_ref):
    # halo_ref: (2, Cp)   row 0 = x[(tile_start-1) % L], row 1 = x[tile_end % L]
    # x_ref:    (TL, Cp)  current sequence tile
    # w_ref:    (3*Cp, Dp) fused per-tap weights [W0; W1; W2]
    # o_ref:    (TL, Dp)
    x = x_ref[...]
    tl = x.shape[0]

    # Circular shift along the sequence (sublane) axis via the XLU rotate slot.
    x_prev = pltpu.roll(x, shift=1, axis=0)        # x[(l-1) % TL]
    x_next = pltpu.roll(x, shift=tl - 1, axis=0)   # x[(l+1) % TL]

    # Patch the two wrap rows so the shift is circular over the FULL sequence,
    # not just this tile (a no-op when a single tile covers the whole sequence).
    row = lax.broadcasted_iota(jnp.int32, x.shape, 0)
    halo_prev = jnp.broadcast_to(halo_ref[0:1, :], x.shape)
    halo_next = jnp.broadcast_to(halo_ref[1:2, :], x.shape)
    x_prev = jnp.where(row == 0, halo_prev, x_prev)
    x_next = jnp.where(row == tl - 1, halo_next, x_next)

    # One fused MXU pass: (TL, 3*Cp) @ (3*Cp, Dp), f32 accumulation.
    x_cat = jnp.concatenate([x_prev, x, x_next], axis=1)
    o_ref[...] = jnp.dot(
        x_cat, w_ref[...], preferred_element_type=jnp.float32
    ).astype(o_ref.dtype)


def token_embedding(x, weight, *, max_seq_tile=512):
    """x: (B, L, C_in) float32. weight: (D_model, C_in, 3) (PyTorch Conv1d layout).

    Returns (B, L, D_model)."""
    B, L, C = x.shape
    D = weight.shape[0]
    assert weight.shape[1] == C and weight.shape[2] == 3

    # Lane-dense padding of channels / model dim.
    Cp = _round_up(C, 128)
    Dp = _round_up(D, 128)

    # Sequence tiling: TL rows per grid step (multiple of 8), L padded to n_t * TL.
    n_t = pl.cdiv(L, max_seq_tile)
    TL = _round_up(pl.cdiv(L, n_t), 8)
    Lp = n_t * TL

    # Pad x. If the sequence is padded, place x[0] right after the last valid row
    # so the in-tile roll still yields the correct circular "next" row for row L-1.
    x_pad = jnp.pad(x, ((0, 0), (0, Lp - L), (0, Cp - C)))
    if Lp > L:
        x_pad = x_pad.at[:, L, :C].set(x[:, 0, :])

    # Per-tile 2-row halo (circular over the original L).
    starts = np.arange(n_t) * TL
    prev_idx = (starts - 1) % L
    next_idx = (starts + TL) % L
    halo = jnp.stack([x[:, prev_idx, :], x[:, next_idx, :]], axis=2)  # (B, n_t, 2, C)
    halo = jnp.pad(halo, ((0, 0), (0, 0), (0, 0), (0, Cp - C)))

    # Fused weight: W_cat[k*Cp:(k+1)*Cp, :] = transpose(weight[:, :, k]), zero-padded.
    w = jnp.transpose(weight, (2, 1, 0))                # (3, C, D)
    w = jnp.pad(w, ((0, 0), (0, Cp - C), (0, Dp - D)))  # (3, Cp, Dp)
    w_cat = w.reshape(3 * Cp, Dp)

    out = pl.pallas_call(
        token_embed_kernel,
        out_shape=jax.ShapeDtypeStruct((B, Lp, Dp), x.dtype),
        grid_spec=pltpu.PrefetchScalarGridSpec(
            num_scalar_prefetch=0,
            grid=(B, n_t),
            in_specs=[
                pl.BlockSpec((None, None, 2, Cp), lambda b, t: (b, t, 0, 0)),
                pl.BlockSpec((None, TL, Cp), lambda b, t: (b, t, 0)),
                pl.BlockSpec((3 * Cp, Dp), lambda b, t: (0, 0)),
            ],
            out_specs=pl.BlockSpec((None, TL, Dp), lambda b, t: (b, t, 0)),
        ),
        compiler_params=pltpu.CompilerParams(
            dimension_semantics=("parallel", "parallel"),
            vmem_limit_bytes=48 * 1024 * 1024,
        ),
    )(halo, x_pad, w_cat)

    return out[:, :L, :D]


def _reference(x, weight):
    # Pure-JAX reference of the circular conv1d decomposition.
    w0 = jnp.transpose(weight[:, :, 0])
    w1 = jnp.transpose(weight[:, :, 1])
    w2 = jnp.transpose(weight[:, :, 2])
    x_prev = jnp.roll(x, shift=1, axis=1)
    x_next = jnp.roll(x, shift=-1, axis=1)
    return x_prev @ w0 + x @ w1 + x_next @ w2


if __name__ == "__main__":
    B, L, C_IN, D_MODEL = 2, 8, 4, 32

    key = jax.random.PRNGKey(0)
    kx, kw = jax.random.split(key)

    # Input in (B, L, C_in) layout (what TokenEmbedding.forward receives).
    x = jax.random.normal(kx, (B, L, C_IN), dtype=jnp.float32)

    # Deterministic kaiming_normal_(mode='fan_in', nonlinearity='leaky_relu')
    # for Conv1d weight (D_model, C_in, 3): fan_in = C_in * 3.
    fan_in = C_IN * 3
    gain = math.sqrt(2.0 / (1.0 + 0.01 ** 2))
    std = gain / math.sqrt(fan_in)
    weight = std * jax.random.normal(kw, (D_MODEL, C_IN, 3), dtype=jnp.float32)

    out = token_embedding(x, weight)
    out = jax.block_until_ready(out)

    ref = _reference(x, weight)
    assert out.shape == (B, L, D_MODEL)
    assert jnp.allclose(out, ref, atol=1e-4, rtol=1e-4)

    print("KERNEL_OK")
</pallas_src>

<mosaic_0001>
module attributes {stable_mosaic.version = 11 : i64} {
  func.func @token_embed_kernel(%arg0: i32, %arg1: i32, %arg2: memref<1x1x2x128xf32, #tpu.memory_space<vmem>>, %arg3: memref<1x8x128xf32, #tpu.memory_space<vmem>>, %arg4: memref<384x128xf32, #tpu.memory_space<vmem>>, %arg5: memref<1x8x128xf32, #tpu.memory_space<vmem>>) attributes {dimension_semantics = [#tpu.dimension_semantics<parallel>, #tpu.dimension_semantics<parallel>], iteration_bounds = array<i64: 2, 1>, scalar_prefetch = 0 : i64, scratch_operands = 0 : i64, tpu.core_type = #tpu.core_type<tc>, window_params = [{transform_indices = @transform_0, window_bounds = array<i64: 1, 1, 2, 128>}, {transform_indices = @transform_1, window_bounds = array<i64: 1, 8, 128>}, {pipeline_mode = #tpu.pipeline_mode<synchronous>, transform_indices = @transform_2, window_bounds = array<i64: 384, 128>}, {transform_indices = @transform_3, window_bounds = array<i64: 1, 8, 128>}]} {
    %c0 = arith.constant 0 : index
    %c0_0 = arith.constant 0 : index
    %c0_1 = arith.constant 0 : index
    %0 = vector.load %arg3[%c0, %c0_0, %c0_1] : memref<1x8x128xf32, #tpu.memory_space<vmem>>, vector<1x8x128xf32>
    %1 = vector.shape_cast %0 : vector<1x8x128xf32> to vector<8x128xf32>
    %c1_i32 = arith.constant 1 : i32
    %2 = tpu.dynamic_rotate %1 by %c1_i32 dim 0 : vector<8x128xf32>, i32 -> vector<8x128xf32>
    %c7_i32 = arith.constant 7 : i32
    %3 = tpu.dynamic_rotate %1 by %c7_i32 dim 0 : vector<8x128xf32>, i32 -> vector<8x128xf32>
    %4 = tpu.iota {dimensions = array<i32: 0>} : vector<8x128xi32>
    %c0_2 = arith.constant 0 : index
    %c0_3 = arith.constant 0 : index
    %c0_4 = arith.constant 0 : index
    %c0_5 = arith.constant 0 : index
    %5 = vector.load %arg2[%c0_2, %c0_3, %c0_4, %c0_5] : memref<1x1x2x128xf32, #tpu.memory_space<vmem>>, vector<1x1x1x128xf32>
    %6 = vector.shape_cast %5 : vector<1x1x1x128xf32> to vector<1x128xf32>
    %7 = vector.shape_cast %6 : vector<1x128xf32> to vector<1x128xf32>
    %8 = vector.broadcast %7 : vector<1x128xf32> to vector<8x128xf32>
    %c0_6 = arith.constant 0 : index
    %c0_7 = arith.constant 0 : index
    %c1 = arith.constant 1 : index
    %c0_8 = arith.constant 0 : index
    %9 = vector.load %arg2[%c0_6, %c0_7, %c1, %c0_8] : memref<1x1x2x128xf32, #tpu.memory_space<vmem>>, vector<1x1x1x128xf32>
    %10 = vector.shape_cast %9 : vector<1x1x1x128xf32> to vector<1x128xf32>
    %11 = vector.shape_cast %10 : vector<1x128xf32> to vector<1x128xf32>
    %12 = vector.broadcast %11 : vector<1x128xf32> to vector<8x128xf32>
    %c0_i32 = arith.constant 0 : i32
    %13 = vector.broadcast %c0_i32 : i32 to vector<8x128xi32>
    %14 = arith.cmpi eq, %4, %13 : vector<8x128xi32>
    %15 = arith.select %14, %8, %2 : vector<8x128xi1>, vector<8x128xf32>
    %c7_i32_9 = arith.constant 7 : i32
    %16 = vector.broadcast %c7_i32_9 : i32 to vector<8x128xi32>
    %17 = arith.cmpi eq, %4, %16 : vector<8x128xi32>
    %18 = arith.select %17, %12, %3 : vector<8x128xi1>, vector<8x128xf32>
    %19 = tpu.concatenate %15, %1, %18 in 1 : vector<8x128xf32>, vector<8x128xf32>, vector<8x128xf32> -> vector<8x384xf32>
    %c0_10 = arith.constant 0 : index
    %c0_11 = arith.constant 0 : index
    %20 = vector.load %arg4[%c0_10, %c0_11] : memref<384x128xf32, #tpu.memory_space<vmem>>, vector<384x128xf32>
    %cst = arith.constant dense<0.000000e+00> : vector<8x128xf32>
    %21 = tpu.matmul %19, %20, %cst {dimension_numbers = #tpu.dot_dimension_numbers<[1], [0], [0], [1], [0, 0, 1, 1], [], []>} : vector<8x384xf32>, vector<384x128xf32>, vector<8x128xf32> -> vector<8x128xf32>
    %c0_12 = arith.constant 0 : index
    %c0_13 = arith.constant 0 : index
    %c0_14 = arith.constant 0 : index
    %22 = vector.load %arg5[%c0_12, %c0_13, %c0_14] : memref<1x8x128xf32, #tpu.memory_space<vmem>>, vector<1x8x128xf32>
    %23 = vector.shape_cast %22 : vector<1x8x128xf32> to vector<8x128xf32>
    %24 = vector.shape_cast %21 : vector<8x128xf32> to vector<1x8x128xf32>
    tpu.vector_store %arg5[%c0_12, %c0_13, %c0_14], %24 {strides = array<i32>} : memref<1x8x128xf32, #tpu.memory_space<vmem>>, vector<1x8x128xf32>,
    return
  }
  func.func @transform_0(%arg0: i32, %arg1: i32) -> (i32, i32, i32, i32) {
    %c0_i32 = arith.constant 0 : i32
    %c0_i32_0 = arith.constant 0 : i32
    %c0_i32_1 = arith.constant 0 : i32
    return %arg0, %arg1, %c0_i32, %c0_i32_0 : i32, i32, i32, i32
  }
  func.func @transform_1(%arg0: i32, %arg1: i32) -> (i32, i32, i32) {
    %c0_i32 = arith.constant 0 : i32
    %c0_i32_0 = arith.constant 0 : i32
    return %arg0, %arg1, %c0_i32 : i32, i32, i32
  }
  func.func @transform_2(%arg0: i32, %arg1: i32) -> (i32, i32) {
    %c0_i32 = arith.constant 0 : i32
    %c0_i32_0 = arith.constant 0 : i32
    %c0_i32_1 = arith.constant 0 : i32
    return %c0_i32, %c0_i32_0 : i32, i32
  }
  func.func @transform_3(%arg0: i32, %arg1: i32) -> (i32, i32, i32) {
    %c0_i32 = arith.constant 0 : i32
    %c0_i32_0 = arith.constant 0 : i32
    return %arg0, %arg1, %c0_i32 : i32, i32, i32
  }
}

</mosaic_0001>

<bundles_post_ra>
// kernel: tpu_custom_call.1
= control target key start
LH: loop header
LB: loop body
LE: loop exit
PB: predicated region body
PF: predicated region fallthrough
CT: control target
= control target key end

     0   :  { %s1318_s0 = inlined_call_operand.hbm [shape: f32[2,1,2,128], index: 0, kind: input, shape index: {}]   ;;  %s1319_s1 = inlined_call_operand.hbm [shape: f32[2,8,128], index: 1, kind: input, shape index: {}]   ;;  %s1320_s2 = inlined_call_operand.hbm [shape: f32[384,128], index: 2, kind: input, shape index: {}]   ;;  %s1321_s3 = inlined_call_operand.hbm [shape: f32[2,8,128], index: 3, kind: output, shape index: {}]  }
   0x1   :  { %1326 = sst [smem:[#allocation13_spill]] %s1318_s0 }
   0x2   :  { %8 = vsyncpa [#allocation3], 0 }
   0x3   :  { %10 = vsyncpa [#allocation3 + $0x1], 0 }
   0x4   :  { %11 = vsyncpa [#allocation6], 0 }
   0x5   :  { %13 = vsyncpa [#allocation6 + $0x1], 0 }
   0x6   :  { %14 = vsyncpa [#allocation4], 0 }
   0x7   :  { %16 = vsyncpa [#allocation4 + $0x1], 0  ;;  %s1048_s12 = smov 0   ;;  %s1050_s13 = smov 0  }
   0x8   :  { %s1052_s14 = smov 0   ;;  %s1054_s15 = smov 0  }
   0x9   :  { %s1056_s16 = smov 0   ;;  %s1058_s17 = smov 0  }
   0xa LB: > { %s1079_s18 = sadd.s32 4294967295, %s1017_s17   ;;  %s594_s19 = sadd.s32 4294967294, %s1017_s17   ;;  %s1017_s17 = sphi %s1058_s17, %s22_s17   ;;  %s1013_s16 = sphi %s1056_s16, %s1347_s16   ;;  %s1009_s15 = sphi %s1054_s15, %s1346_s15   ;;  %s1005_s14 = sphi %s1052_s14, %s1345_s14   ;;  %s1001_s13 = sphi %s1050_s13, %s1344_s13   ;;  %s997_s12 = sphi %s1048_s12, %s1343_s12  }
   0xb   : > { %p56_p0 = scmp.ne.s32.totalorder %s1001_s13, %s997_s12  ;;  %p1322_p1 = scmp.eq.s32.totalorder %s1079_s18, 0 }
   0xc   : > { %p137_p3 = scmp.eq.s32.totalorder %s594_s19, 1  ;;  %p595_p5 = scmp.ge.s32.totalorder %s1017_s17, 1 }
   0xd   : > { %p1088_p4 = por %p1322_p1, %p56_p0  ;;  %p144_p7 = scmp.lt.s32.totalorder %s1017_s17, 3 }
   0xe   : > { %p1093_p6 = por %p137_p3, %p56_p0  ;;  %s1019_s23 = smov [#allocation7]  }
   0xf   : > { %s1327_s20 = scalar_select %p1088_p4, 1, 0 }
  0x10   : > { %s1328_s21 = scalar_select %p1093_p6, 1, 0 }
  0x11   : > { %p1098_p8 = pnand %p595_p5, %p144_p7  ;;  %s156_s24 = sshll.u32 %s1019_s23, 4  ;;  %s157_s24 = int_to_ptr.vmem [resolvable:$true] %s156_s24 }
  0x12   : > { %s34_s26 = sadd.s32 1, %s1013_s16  ;;  %s839_s29 = scalar_lea.hbm %s1320_s2, 6144 }
  0x13   : > { %s1329_s22 = scalar_select %p1098_p8, 1, 0 }
  0x14   : > { %p766_p9 = pneg %p1098_p8  ;;  %p840_p12 = scmp.ne.s32.totalorder %s1320_s2, %s839_s29 }
  0x15   : > { %p846_p5 = scmp.lt.u32.totalorder %s839_s29, %s1320_s2 }
  0x16   : > { %p1107_p11 = pnand %p766_p9, %p1322_p1 }
  0x18   : > { %p841_p13 = pneg %p1107_p11 }
  0x1a   : > { %p842_p0 = pnand %p841_p13, %p840_p12 }
  0x1c   : > { %p843_p3 = pneg %p842_p0 }
  0x1e   : > { %p848_p7 = pnand %p846_p5, %p843_p3 }
  0x20   : > { %851 = shalt.err (!%p848_p7)
}
  0x21   : > { %s852_s7 = scalar_lea.vmem %s157_s24, 6144  ;;  %p860_p2 = scmp.lt.s32.totalorder %s157_s24, %s157_s24 }
  0x22   : > { %p853_p9 = scmp.ne.s32.totalorder %s157_s24, %s852_s7  ;;  %p861_p6 = scmp.lt.s32.totalorder %s852_s7, %s852_s7 }
  0x24   : > { %p855_p10 = pnand %p853_p9, %p841_p13  ;;  %p862_p4 = por %p861_p6, %p860_p2 }
  0x26   : > { %p856_p1 = pneg %p855_p10 }
  0x28   : > { %p863_p8 = pnand %p862_p4, %p856_p1 }
  0x2a   : > { %866 = shalt.err (!%p863_p8)
}
  0x2b   : > { %s1020_s8 = smov 128   ;;  %s1021_s9 = smov 8  }
  0x2c   : > { %769 = dma.hbm_to_vmem [thread:$0]  (!%p1107_p11), %s1320_s2, 6144, %s157_s24, [#allocation6], %s1020_s8, %s1020_s8, %s1021_s9  }
  0x2d   : > { %p36_p1 = scmp.ge.s32.totalorder %s34_s26, 2  ;;  %s43_s19 = sadd.s32 1, %s1005_s14 }
  0x2e   : > { %p50_p2 = scmp.ne.s32.totalorder %s1005_s14, %s1001_s13  ;;  %p51_p4 = scmp.eq.s32.totalorder %s1017_s17, 0 }
  0x2f   : > { %s1349_s26 = smov (%p36_p1, %s34_s26), 0  ;;  %p1332_p8 = scmp.eq.s32.totalorder %s1079_s18, 1 }
  0x30   : > { %p1134_p6 = por %p51_p4, %p50_p2  ;;  %s38_s27 = ssub.s32 %s1013_s16, %s1349_s26 }
  0x31   : > { %p1140_p10 = por %p1332_p8, %p50_p2  ;;  %p782_p11 = scmp.lt.s32.totalorder %s1017_s17, 2 }
  0x32   : > { %p41_p12 = scmp.eq.s32.totalorder %s38_s27, 0  ;;  %s1148_s24 = sand.u32 1, %s1005_s14  }
  0x33   : > { %s1333_s25 = scalar_select %p1140_p10, 1, 0 }
  0x34   : > { %s598_s28 = sshll.u32 %s1148_s24, 1  ;;  %s599_s30 = sshll.u32 %s1013_s16, 5 }
  0x35   : > { %s1152_s29 = scalar_select %p41_p12, %s1005_s14, %s43_s19  }
  0x36   : > { %s1334_s0 = sld [smem:[#allocation13_spill]]  ;;  %s174_s7 = scalar_lea.vmem [#allocation2], %s598_s28 }
  0x37   : > { %s182_s8 = sshll.u32 %s174_s7, 4  ;;  %p1164_p13 = pnand %p782_p11, %p1134_p6  ;;  %s1160_s8 = int_to_ptr.vmem [resolvable:$true] %s182_s8 }
  0x38   : > { %s189_s10 = sand.u32 1, %s1017_s17   ;;  %s600_s11 = sshll.u32 %s1148_s24, 3 }
  0x39   : > { %s171_s19 = scalar_lea.sflag [#allocation3], %s1148_s24  ;;  %p869_p3 = pneg %p1164_p13 }
  0x3c   : > { %s1158_s6 = scalar_lea.hbm %s1334_s0, %s599_s30  ;;  %s872_s23 = scalar_lea.hbm %s1334_s0, 64 }
  0x3d   : > { %s867_s27 = scalar_lea.hbm %s1158_s6, 32  ;;  %p873_p9 = scmp.lt.u32.totalorder %s1158_s6, %s1334_s0 }
  0x3e   : > { %p868_p0 = scmp.ne.s32.totalorder %s1158_s6, %s867_s27  ;;  %p874_p1 = scmp.lt.u32.totalorder %s872_s23, %s867_s27 }
  0x3f   : > { %p876_p4 = scmp.lt.u32.totalorder %s867_s27, %s1158_s6 }
  0x40   : > { %p870_p5 = pnand %p869_p3, %p868_p0  ;;  %p875_p2 = por %p874_p1, %p873_p9 }
  0x42   : > { %p871_p7 = pneg %p870_p5  ;;  %p877_p6 = por %p876_p4, %p875_p2 }
  0x44   : > { %p878_p8 = pnand %p877_p6, %p871_p7 }
  0x46   : > { %881 = shalt.err (!%p878_p8)
}
  0x47   : > { %s882_s7 = scalar_lea.vmem %s1160_s8, 32  ;;  %s1022_s28 = smov [#allocation2]  }
  0x48   : > { %p883_p11 = scmp.ne.s32.totalorder %s1160_s8, %s882_s7  ;;  %s887_s30 = sshll.u32 %s1022_s28, 4  ;;  %s888_s30 = int_to_ptr.vmem [resolvable:$false] %s887_s30 }
  0x49   : > { %s889_s4 = scalar_lea.vmem %s888_s30, 64  ;;  %p890_p5 = scmp.lt.s32.totalorder %s1160_s8, %s888_s30 }
  0x4a   : > { %p885_p12 = pnand %p883_p11, %p869_p3  ;;  %p891_p9 = scmp.lt.s32.totalorder %s889_s4, %s882_s7 }
  0x4c   : > { %p886_p0 = pneg %p885_p12  ;;  %p892_p1 = por %p891_p9, %p890_p5 }
  0x4e   : > { %p893_p2 = pnand %p892_p1, %p886_p0 }
  0x50   : > { %896 = shalt.err (!%p893_p2)
}
  0x51   : > { %773 = dma.hbm_to_vmem [thread:$0]  (!%p1164_p13), %s1158_s6, 32, %s1160_s8, %s171_s19  }
  0x52   : > { %s601_s27 = sshll.u32 %s1013_s16, 7  ;;  %s193_s7 = scalar_lea.vmem [#allocation5], %s600_s11 }
  0x53   : > { %s1200_s28 = scalar_lea.hbm %s1319_s1, %s601_s27  ;;  %s201_s30 = sshll.u32 %s193_s7, 4  ;;  %s202_s30 = int_to_ptr.vmem [resolvable:$true] %s201_s30 }
  0x54   : > { %s190_s4 = scalar_lea.sflag [#allocation6], %s189_s10  ;;  %s897_s0 = scalar_lea.hbm %s1200_s28, 128 }
  0x55   : > { %p898_p7 = scmp.ne.s32.totalorder %s1200_s28, %s897_s0  ;;  %s902_s19 = scalar_lea.hbm %s1319_s1, 256 }
  0x56   : > { %p903_p8 = scmp.lt.u32.totalorder %s1200_s28, %s1319_s1  ;;  %p904_p11 = scmp.lt.u32.totalorder %s902_s19, %s897_s0 }
  0x57   : > { %p900_p4 = pnand %p898_p7, %p869_p3  ;;  %p906_p0 = scmp.lt.u32.totalorder %s897_s0, %s1200_s28 }
  0x58   : > { %p905_p12 = por %p904_p11, %p903_p8 }
  0x59   : > { %p901_p6 = pneg %p900_p4 }
  0x5a   : > { %p907_p5 = por %p906_p0, %p905_p12 }
  0x5c   : > { %p908_p9 = pnand %p907_p5, %p901_p6 }
  0x5e   : > { %911 = shalt.err (!%p908_p9)
}
  0x5f   : > { %s912_s10 = scalar_lea.vmem %s202_s30, 128  ;;  %s1023_s11 = smov [#allocation5]  }
  0x60   : > { %p913_p1 = scmp.ne.s32.totalorder %s202_s30, %s912_s10  ;;  %s917_s23 = sshll.u32 %s1023_s11, 4  ;;  %s918_s23 = int_to_ptr.vmem [resolvable:$false] %s917_s23 }
  0x61   : > { %s919_s5 = scalar_lea.vmem %s918_s23, 256  ;;  %p920_p4 = scmp.lt.s32.totalorder %s202_s30, %s918_s23 }
  0x62   : > { %p915_p2 = pnand %p913_p1, %p869_p3  ;;  %p921_p10 = scmp.lt.s32.totalorder %s919_s5, %s912_s10 }
  0x64   : > { %p916_p7 = pneg %p915_p2  ;;  %p922_p8 = por %p921_p10, %p920_p4 }
  0x66   : > { %p923_p11 = pnand %p922_p8, %p916_p7 }
  0x68   : > { %926 = shalt.err (!%p923_p11)
}
  0x69   : > { %776 = dma.hbm_to_vmem [thread:$0]  (!%p1164_p13), %s1200_s28, 128, %s202_s30, %s190_s4  }
  0x6a   : > { %p1336_p6 = scmp.ne.s32.totalorder %s1329_s22, 0 }
  0x6b   : > { %s1228_s0 = sand.u32 (!%p1336_p6), 1, %s1001_s13   ;;  %p1337_p10 = scmp.ne.s32.totalorder (!%p1336_p6), %s1327_s20, 0 }
  0x6c   : > { %210 = sbr.rel (%p1336_p6) target bundleno = 388 (0x184), region = 32  ;;  %s603_s7 = sshll.u32 (!%p1336_p6), %s1228_s0, 1 }
  0x6d   : > { %s213_s6 = scalar_lea.sflag (!%p1336_p6), [#allocation3], %s1228_s0  ;;  %s1232_s8 = scalar_lea.vmem (!%p1336_p6), [#allocation2], %s603_s7 }
  0x73   : > { %980 = dma.done.wait (%p1337_p10), %s213_s6, 32  }
  0x74   : > { %982 = vsyncadd (%p1337_p10), %s213_s6, 4294967264  ;;  %s221_s22 = sand.u32 1, %s1079_s18   ;;  %s604_s9 = sshll.u32 %s1228_s0, 3 }
  0x75   : > { %s222_s28 = scalar_lea.sflag [#allocation6], %s221_s22  ;;  %s1242_s30 = scalar_lea.vmem [#allocation5], %s604_s9 }
  0x76   : > { %984 = dma.done.wait (%p1337_p10), %s222_s28, 128  }
  0x77   : > { %986 = vsyncadd (%p1337_p10), %s222_s28, 4294967168  ;;  %p1338_p13 = scmp.eq.s32.totalorder %s1079_s18, 0 }
  0x79   : > { %988 = dma.done.wait (%p1338_p13), [#allocation6], 6144   ;;  %p1339_p3 = pmov %p1338_p13 }
  0x7a   : > { %v1024_v0 = vmov 0.0|0.0   ;;  %vm1025_vm0 = vmmov 0   ;;  %v1026_v1 = vmov 0.0   ;;  %v292_v2 = vld [vmem:[#allocation7 + $0x80] sm:$0xff]  ;;  %v293_v3 = vld [vmem:[#allocation7 + $0x88] sm:$0xff]  ;;  %v294_v11 = vld [vmem:[#allocation7 + $0x90] sm:$0xff] }
  0x7b   : > { %990 = vsyncadd (%p1339_p3), [#allocation6], 4294961152  ;;  %732 = vmatprep.subr.bf16.mxu1 %v1024_v0  ;;  %697 = vmatprep.mubr.msk.f32.mxu1 %vm1025_vm0, %v1026_v1  ;;  %v276_v4 = vld [vmem:[#allocation7] sm:$0xff]  ;;  %v700_v5 = vpack.c.bf16 %v293_v3, %v292_v2  ;;  %v277_v6 = vld [vmem:[#allocation7 + $0x8] sm:$0xff]  ;;  %v260_v1 = vlaneseq  ;;  %s610_s18 = sshll.u32 %s1009_s15, 7  ;;  %s256_s20 = scalar_lea.vmem [#allocation8], %s604_s9 }
  0x7c   : > { %v308_v7 = vld [vmem:[#allocation7 + $0x100] sm:$0xff]  ;;  %v309_v8 = vld [vmem:[#allocation7 + $0x108] sm:$0xff]  ;;  %v702_v9 = vpack.c.bf16 %v277_v6, %v276_v4  ;;  %v295_v12 = vld [vmem:[#allocation7 + $0x98] sm:$0xff]  ;;  %s480_s4 = sshll.u32 %s256_s20, 4  ;;  %s1269_s27 = scalar_lea.hbm %s1321_s3, %s610_s18  ;;  %s1271_s4 = int_to_ptr.vmem [resolvable:$true] %s480_s4 }
  0x7d   : > { %v733_v10 = vpack.c.bf16 %v309_v8, %v308_v7  ;;  %v278_v13 = vld [vmem:[#allocation7 + $0x10] sm:$0xff]  ;;  %701 = vmatprep.subr.bf16.mxu0 %v700_v5  ;;  %v704_v14 = vpack.c.bf16 %v295_v12, %v294_v11  ;;  %v279_v15 = vld [vmem:[#allocation7 + $0x18] sm:$0xff]  ;;  %v296_v20 = vld [vmem:[#allocation7 + $0xa0] sm:$0xff]  ;;  %v261_v11 = vshrl.u32 %v260_v1, 7  ;;  %s466_s10 = scalar_lea.sflag [#allocation4], %s1228_s0  ;;  %s927_s11 = scalar_lea.vmem %s1271_s4, 128 }
  0x7e   : > { %v310_v16 = vld [vmem:[#allocation7 + $0x110] sm:$0xff]  ;;  %v311_v17 = vld [vmem:[#allocation7 + $0x118] sm:$0xff]  ;;  %703 = vmatpush3.bf16.msra.mxu0 %v702_v9  ;;  %v706_v18 = vpack.c.bf16 %v279_v15, %v278_v13  ;;  %v297_v21 = vld [vmem:[#allocation7 + $0xa8] sm:$0xff]  ;;  %p928_p12 = scmp.ne.s32.totalorder %s1271_s4, %s927_s11  ;;  %p1340_p0 = scmp.ne.s32.totalorder %s1333_s25, 0 }
  0x7f   : > { %734 = vmatpush3.bf16.msra.mxu1 %v733_v10  ;;  %v736_v19 = vpack.c.bf16 %v311_v17, %v310_v16  ;;  %v280_v22 = vld [vmem:[#allocation7 + $0x20] sm:$0xff]  ;;  %705 = vmatprep.subr.bf16.mxu0 %v704_v14  ;;  %v708_v23 = vpack.c.bf16 %v297_v21, %v296_v20  ;;  %v281_v24 = vld [vmem:[#allocation7 + $0x28] sm:$0xff]  ;;  %v298_v27 = vld [vmem:[#allocation7 + $0xb0] sm:$0xff]  ;;  %vm272_vm1 = vcmp.eq.s32.totalorder %v261_v11, 0  ;;  %vm274_vm2 = vcmp.eq.s32.totalorder %v261_v11, 7  ;;  %s1027_s15 = smov [#allocation8]  }
  0x80   : > { %735 = vmatprep.subr.bf16.mxu1 %v1024_v0  ;;  %v312_v25 = vld [vmem:[#allocation7 + $0x120] sm:$0xff]  ;;  %v313_v26 = vld [vmem:[#allocation7 + $0x128] sm:$0xff]  ;;  %v299_v28 = vld [vmem:[#allocation7 + $0xb8] sm:$0xff]  ;;  %v710_v29 = vpack.c.bf16 %v281_v24, %v280_v22  ;;  %p929_p5 = pnand %p928_p12, %p1340_p0  ;;  %s931_s23 = sshll.u32 %s1027_s15, 4  ;;  %s932_s23 = int_to_ptr.vmem [resolvable:$false] %s931_s23 }
  0x81   : > { %v739_v30 = vpack.c.bf16 %v313_v26, %v312_v25  ;;  %v282_v31 = vld [vmem:[#allocation7 + $0x30] sm:$0xff]  ;;  %v712_v32 = vpack.c.bf16 %v299_v28, %v298_v27  ;;  %v283_v33 = vld [vmem:[#allocation7 + $0x38] sm:$0xff]  ;;  %v300_v36 = vld [vmem:[#allocation7 + $0xc0] sm:$0xff]  ;;  %s933_s5 = scalar_lea.vmem %s932_s23, 256  ;;  %p934_p1 = scmp.lt.s32.totalorder %s1271_s4, %s932_s23 }
  0x82   : > { %707 = vmatpush3.bf16.msra.mxu0 %v706_v18  ;;  %v314_v34 = vld [vmem:[#allocation7 + $0x130] sm:$0xff]  ;;  %v315_v35 = vld [vmem:[#allocation7 + $0x138] sm:$0xff]  ;;  %v301_v37 = vld [vmem:[#allocation7 + $0xc8] sm:$0xff]  ;;  %v714_v38 = vpack.c.bf16 %v283_v33, %v282_v31  ;;  %p930_p9 = pneg %p929_p5  ;;  %p935_p2 = scmp.lt.s32.totalorder %s933_s5, %s927_s11 }
  0x83   : > { %737 = vmatpush3.bf16.msra.mxu1 %v736_v19  ;;  %709 = vmatprep.subr.bf16.mxu0 %v708_v23  ;;  %v742_v39 = vpack.c.bf16 %v315_v35, %v314_v34  ;;  %v284_v40 = vld [vmem:[#allocation7 + $0x40] sm:$0xff]  ;;  %v716_v41 = vpack.c.bf16 %v301_v37, %v300_v36  ;;  %v285_v42 = vld [vmem:[#allocation7 + $0x48] sm:$0xff]  ;;  %v302_v45 = vld [vmem:[#allocation7 + $0xd0] sm:$0xff] }
  0x84   : > { %738 = vmatprep.subr.bf16.mxu1 %v1024_v0  ;;  %v316_v43 = vld [vmem:[#allocation7 + $0x140] sm:$0xff]  ;;  %v317_v44 = vld [vmem:[#allocation7 + $0x148] sm:$0xff]  ;;  %v303_v46 = vld [vmem:[#allocation7 + $0xd8] sm:$0xff]  ;;  %v718_v47 = vpack.c.bf16 %v285_v42, %v284_v40  ;;  %p936_p7 = por %p935_p2, %p934_p1 }
  0x85   : > { %v745_v48 = vpack.c.bf16 %v317_v44, %v316_v43  ;;  %v286_v49 = vld [vmem:[#allocation7 + $0x50] sm:$0xff]  ;;  %v287_v50 = vld [vmem:[#allocation7 + $0x58] sm:$0xff]  ;;  %v720_v51 = vpack.c.bf16 %v303_v46, %v302_v45  ;;  %v304_v55 = vld [vmem:[#allocation7 + $0xe0] sm:$0xff] }
  0x86   : > { %711 = vmatpush3.bf16.msra.mxu0 %v710_v29  ;;  %v318_v52 = vld [vmem:[#allocation7 + $0x150] sm:$0xff]  ;;  %v319_v53 = vld [vmem:[#allocation7 + $0x158] sm:$0xff]  ;;  %v305_v56 = vld [vmem:[#allocation7 + $0xe8] sm:$0xff]  ;;  %v722_v57 = vpack.c.bf16 %v287_v50, %v286_v49  ;;  %p937_p4 = pnand %p936_p7, %p930_p9 }
  0x87   : > { %740 = vmatpush3.bf16.msra.mxu1 %v739_v30  ;;  %713 = vmatprep.subr.bf16.mxu0 %v712_v32  ;;  %v257_v54 = vld [vmem:[%s1242_s30] sm:$0xff]  ;;  %v748_v58 = vpack.c.bf16 %v319_v53, %v318_v52  ;;  %v288_v59 = vld [vmem:[#allocation7 + $0x60] sm:$0xff]  ;;  %v724_v60 = vpack.c.bf16 %v305_v56, %v304_v55  ;;  %v289_v61 = vld [vmem:[#allocation7 + $0x68] sm:$0xff] }
  0x88   : > { %741 = vmatprep.subr.bf16.mxu1 %v1024_v0  ;;  %388 = vmatprep.mubr.f32.mxu0 %v257_v54  ;;  %v320_v62 = vld [vmem:[#allocation7 + $0x160] sm:$0xff]  ;;  %v321_v63 = vld [vmem:[#allocation7 + $0x168] sm:$0xff]  ;;  %v306_v2 = vld [vmem:[#allocation7 + $0xf0] sm:$0xff]  ;;  %v726_v4 = vpack.c.bf16 %v289_v61, %v288_v59  ;;  %v258_v13 = vrot.slane %v257_v54, 7  ;;  %v259_v14 = vrot.slane %v257_v54, 1 }
  0x89   : > { %v307_v3 = vld [vmem:[#allocation7 + $0xf8] sm:$0xff]  ;;  %v751_v5 = vpack.c.bf16 %v321_v63, %v320_v62  ;;  %v290_v6 = vld [vmem:[#allocation7 + $0x70] sm:$0xff]  ;;  %v607_v16 = vld [vmem:[%s1232_s8] ss:$0 sm:$0xff] }
  0x8a   : > { %715 = vmatpush3.bf16.msra.mxu0 %v714_v38  ;;  %v728_v7 = vpack.c.bf16 %v307_v3, %v306_v2  ;;  %v291_v8 = vld [vmem:[#allocation7 + $0x78] sm:$0xff]  ;;  %v322_v9 = vld [vmem:[#allocation7 + $0x170] sm:$0xff]  ;;  %v608_v17 = vld [vmem:[%s1232_s8 + $0x1] ss:$0 sm:$0xff]  ;;  %v273_v18 = vsel %vm272_vm1, %v607_v16, %v258_v13 }
  0x8b   : > { %743 = vmatpush3.bf16.msra.mxu1 %v742_v39  ;;  %717 = vmatprep.subr.bf16.mxu0 %v716_v41  ;;  %v323_v10 = vld [vmem:[#allocation7 + $0x178] sm:$0xff]  ;;  %v730_v12 = vpack.c.bf16 %v291_v8, %v290_v6  ;;  %v275_v19 = vsel %vm274_vm2, %v608_v17, %v259_v14 }
  0x8c   : > { %744 = vmatprep.subr.bf16.mxu1 %v1024_v0  ;;  %v754_v15 = vpack.c.bf16 %v323_v10, %v322_v9 }
  0x8e   : > { %719 = vmatpush3.bf16.msra.mxu0 %v718_v47 }
  0x8f   : > { %746 = vmatpush3.bf16.msra.mxu1 %v745_v48  ;;  %721 = vmatprep.subr.bf16.mxu0 %v720_v51 }
  0x90   : > { %747 = vmatprep.subr.bf16.mxu1 %v1024_v0 }
  0x92   : > { %723 = vmatpush3.bf16.msra.mxu0 %v722_v57 }
  0x93   : > { %749 = vmatpush3.bf16.msra.mxu1 %v748_v58  ;;  %725 = vmatprep.subr.bf16.mxu0 %v724_v60 }
  0x94   : > { %750 = vmatprep.subr.bf16.mxu1 %v1024_v0 }
  0x96   : > { %727 = vmatpush3.bf16.msra.mxu0 %v726_v4 }
  0x97   : > { %752 = vmatpush3.bf16.msra.mxu1 %v751_v5  ;;  %729 = vmatprep.subr.bf16.mxu0 %v728_v7 }
  0x98   : > { %753 = vmatprep.subr.bf16.mxu1 %v1024_v0 }
  0x9a   : > { %731 = vmatpush3.bf16.msra.mxu0 %v730_v12 }
  0x9b   : > { %755 = vmatpush3.bf16.msra.mxu1 %v754_v15 }
  0x9d   : > { %389 = vmatmul.mubr.f32.vlgmr.msra.gmra.mrb[0].mxu0 %v273_v18 }
  0x9e   : > { %698 = vmatmul.mubr.f32.vlgmr.msra.gmra.mrb[0].mxu1 %v275_v19 }
 0x170   : > { %v645_v20 = vpop.f32.mrb[0].mxu0 }
 0x171   : > { %v460_v21 = vpop.f32.mrb[0].mxu1  ;;  %v646_v22 = vpop.f32.mrb[1].mxu0 }
 0x172   : > { %v699_v23 = vpop.f32.mrb[1].mxu1  ;;  %v647_v0 = vadd.f32 %v646_v22, %v645_v20 }
 0x174   : > { %v461_v24 = vadd.f32 %v647_v0, %v460_v21 }
 0x176   : > { %464 = vst [vmem:[%s256_s20] sm:$0xff] %v461_v24 }
 0x177   : > { %940 = shalt.err (!%p937_p4)
}
 0x178   : > { %s941_s0 = scalar_lea.hbm %s1269_s27, 128  ;;  %s945_s8 = scalar_lea.hbm %s1321_s3, 256 }
 0x179   : > { %p942_p8 = scmp.ne.s32.totalorder %s1269_s27, %s941_s0  ;;  %p946_p10 = scmp.lt.u32.totalorder %s1269_s27, %s1321_s3 }
 0x17a   : > { %p947_p13 = scmp.lt.u32.totalorder %s945_s8, %s941_s0  ;;  %p949_p12 = scmp.lt.u32.totalorder %s941_s0, %s1269_s27 }
 0x17b   : > { %p943_p11 = pnand %p942_p8, %p1340_p0 }
 0x17c   : > { %p948_p3 = por %p947_p13, %p946_p10 }
 0x17d   : > { %p944_p6 = pneg %p943_p11 }
 0x17e   : > { %p950_p5 = por %p949_p12, %p948_p3 }
 0x180   : > { %p951_p9 = pnand %p950_p5, %p944_p6 }
 0x182   : > { %954 = shalt.err (!%p951_p9)
}
 0x183   : > { %764 = dma.vmem_to_hbm [thread:$0]  (%p1340_p0), %s1271_s4, 128, %s1269_s27, %s466_s10  }
 0x184 PF: > { %s492_s28 = sand.u32 1, %s997_s12   ;;  %p1341_p1 = scmp.ne.s32.totalorder %s1328_s21, 0 }
 0x185   : > { %p1342_p2 = scmp.ge.s32.totalorder %s1017_s17, 2  ;;  %s493_s30 = scalar_lea.sflag [#allocation4], %s492_s28 }
 0x187   : > { %p778_p7 = pnand %p1342_p2, %p1341_p1 }
 0x189   : > { %992 = dma.done.wait (!%p778_p7), %s493_s30, 128  }
 0x18a   : > { %994 = vsyncadd (!%p778_p7), %s493_s30, 4294967168  ;;  %s22_s17 = sadd.s32 1, %s1017_s17   ;;  %s1343_s12 = smov %s1001_s13 }
 0x18b   : > { %p19_p4 = scmp.ge.s32.totalorder %s22_s17, 4   ;;  %s1344_s13 = smov %s1005_s14 }
 0x18c   : > { %s1345_s14 = smov %s1152_s29  ;;  %s1346_s15 = smov %s1013_s16 }
 0x18d   : > { %s1347_s16 = smov %s1349_s26  ;;  %21 = sbr.rel (!%p19_p4) target bundleno = 10 (0xa), region = 94 }
 0x194   :  { %498 = vsyncpa [#allocation3], 1 }
 0x195   :  { %500 = vsyncpa [#allocation3 + $0x1], 1 }
 0x196   :  { %501 = vsyncpa [#allocation6], 1 }
 0x197   :  { %503 = vsyncpa [#allocation6 + $0x1], 1 }
 0x198   :  { %504 = vsyncpa [#allocation4], 1 }
 0x199   :  { %506 = vsyncpa [#allocation4 + $0x1], 1 }

</bundles_post_ra>
